<compile_context>
chip_gen: v5e
topology: v5e:2x2
jax: 0.10.0
libtpu: 0.0.40
codegen_flags: <defaults>
</compile_context>

<pallas_src>
import math
import functools

import jax
import jax.numpy as jnp
from jax.experimental import pallas as pl
from jax.experimental.pallas import tpu as pltpu


# ----------------------- config (mirrors `config` in the module) -----------------------
class config:
    emb_size = 32
    num_head = 4
    head_size = emb_size // num_head
    num_block = 2
    enable_causal_mode = True


LANE = 128  # padded channel width (lane-dense)


# ----------------------------------- Pallas kernel -------------------------------------
def _self_attention_kernel(x_ref, w_ref, o_ref, *, BB, T, C, CP, H, D, causal):
    # x_ref: (BB, T, CP)  padded block of BB batch elements (lanes C..CP-1 are zero)
    # w_ref: (CP + C, CP) bf16 packed weight slab:
    #        rows 0:CP   -> padded fused QKV weight (q-cols pre-scaled by 1/sqrt(D))
    #        rows CP:CP+C-> padded output-projection weight
    # o_ref: (BB, T, CP)  padded output (lanes C.. are garbage-free zeros of the matmul)
    R = BB * T

    x = x_ref[...].reshape(R, CP).astype(jnp.float32)            # (R, CP)

    # --- normalize(x): parameter-free RMS norm over the REAL C channels (f32 math) ---
    # Padded lanes are zero, so the sum over CP lanes equals the sum over C channels,
    # but the divisor must be C (not CP).
    ss = jnp.sum(x * x, axis=-1, keepdims=True)
    xn = (x * jax.lax.rsqrt(ss * (1.0 / C) + 1e-6)).astype(jnp.bfloat16)   # (R, CP) bf16

    w = w_ref[...]                                                # (CP + C, CP) bf16
    w_qkv = w[0:CP, :]                                            # (CP, CP)
    w_out = w[CP:CP + C, :]                                       # (C,  CP)

    # --- fused QKV projection: one lane-dense (R,CP)@(CP,CP) matmul (bf16 in, f32 acc) ---
    qkv = jnp.dot(xn, w_qkv, preferred_element_type=jnp.float32)  # (R, CP) f32
    qkv = qkv.astype(jnp.bfloat16)

    # q/k/v are in-vreg lane selects (3C = 96 <= 128 lanes).
    def to_heads(z):                                              # (R, C) -> (BB*H, T, D)
        return z.reshape(BB, T, H, D).transpose(0, 2, 1, 3).reshape(BB * H, T, D)

    qh = to_heads(qkv[:, 0 * C:1 * C])                            # (BB*H, T, D) bf16 (pre-scaled)
    kh = to_heads(qkv[:, 1 * C:2 * C])
    vh = to_heads(qkv[:, 2 * C:3 * C])

    # --- single batched attention over all BB*H heads (no per-batch Python unroll) ---
    s = jnp.einsum('ztd,zsd->zts', qh, kh,
                   preferred_element_type=jnp.float32)            # (BB*H, T, T) f32

    if causal:
        row = jax.lax.broadcasted_iota(jnp.int32, (T, T), 0)
        col = jax.lax.broadcasted_iota(jnp.int32, (T, T), 1)
        bias = jnp.where(row >= col, 0.0, -1e30).astype(jnp.float32)   # finite, not -inf
        s = s + bias[None, :, :]

    m = jnp.max(s, axis=-1, keepdims=True)
    p = jnp.exp(s - m)
    l = jnp.sum(p, axis=-1, keepdims=True)
    p = p * pl.reciprocal(l, approx=True)                         # EUP slot, not VPU divide

    y = jnp.einsum('zts,zsd->ztd', p.astype(jnp.bfloat16), vh,
                   preferred_element_type=jnp.float32)            # (BB*H, T, D) f32
    yb = (y.reshape(BB, H, T, D).transpose(0, 2, 1, 3)
           .reshape(R, C).astype(jnp.bfloat16))                   # (R, C)

    # --- output projection: (R, C) @ (C, CP) -> lane-dense (R, CP) store ---
    out = jnp.dot(yb, w_out, preferred_element_type=jnp.float32)  # (R, CP)
    o_ref[...] = out.reshape(BB, T, CP).astype(o_ref.dtype)


# ----------------------------------- wrapper --------------------------------------------
def _num_tensorcores():
    """Heuristic: v7x exposes 2 TensorCores that megacore-shard 'parallel' grid axes."""
    try:
        kind = (getattr(jax.devices()[0], "device_kind", "") or "").lower()
        if "7" in kind:
            return 2
    except Exception:
        pass
    return 1


def _pick_batch_block(B, T, num_cores=1, target_rows=1024):
    """Largest divisor BB of B with BB*T <= target_rows, while keeping at least
    `num_cores` grid steps when possible (so v7x's two TCs both get work).  On
    single-TC chips this yields the maximal block (fewest ~0.35us grid steps)."""
    best = 1
    for cand in range(1, B + 1):
        if B % cand != 0:
            continue
        if cand * T > target_rows:
            continue
        if cand > 1 and (B // cand) < num_cores:
            continue
        best = cand
    return best


def self_attention(x, w1_t, w2_t):
    """x: (B, T, C) float32; w1_t: (C, 3C) fused QKV weight (transposed nn.Linear);
    w2_t: (C, C) output projection weight (transposed nn.Linear)."""
    B, T, C = x.shape
    H, D = config.num_head, config.head_size
    assert C == config.emb_size and H * D == C
    CP = LANE
    assert C <= CP and 3 * C <= CP

    # --- weight prep (once, wrapper-side): fold 1/sqrt(D) into Wq, fuse QKV, pad to
    # lane-dense 128, and pack everything into ONE bf16 slab of shape (CP + C, CP). ---
    scale = 1.0 / math.sqrt(D)
    wq = w1_t[:, 0 * C:1 * C] * scale
    wk = w1_t[:, 1 * C:2 * C]
    wv = w1_t[:, 2 * C:3 * C]
    w_qkv = jnp.concatenate([wq, wk, wv], axis=1)                  # (C, 3C)
    w_qkv = jnp.pad(w_qkv, ((0, CP - C), (0, CP - 3 * C)))         # (CP, CP)
    w_out = jnp.pad(w2_t, ((0, 0), (0, CP - C)))                   # (C, CP)
    w_slab = jnp.concatenate([w_qkv, w_out], axis=0).astype(jnp.bfloat16)  # (CP+C, CP)

    # Zero-pad channels of x to CP (lane-dense loads; RMS norm in-kernel divides by C).
    x_p = jnp.pad(x, ((0, 0), (0, 0), (0, CP - C)))                # (B, T, CP)

    BB = _pick_batch_block(B, T, num_cores=_num_tensorcores(), target_rows=1024)
    grid = (B // BB,)

    kernel = functools.partial(
        _self_attention_kernel,
        BB=BB, T=T, C=C, CP=CP, H=H, D=D, causal=config.enable_causal_mode)

    out_p = pl.pallas_call(
        kernel,
        out_shape=jax.ShapeDtypeStruct((B, T, CP), x.dtype),
        grid_spec=pltpu.PrefetchScalarGridSpec(
            num_scalar_prefetch=0,
            grid=grid,
            in_specs=[
                pl.BlockSpec((BB, T, CP), lambda i: (i, 0, 0)),
                pl.BlockSpec((CP + C, CP), lambda i: (0, 0)),
            ],
            out_specs=pl.BlockSpec((BB, T, CP), lambda i: (i, 0, 0)),
        ),
        compiler_params=pltpu.CompilerParams(dimension_semantics=("parallel",)),
    )(x_p, w_slab)

    # Strip the channel padding (kernel output lanes C.. are exact zeros from the
    # zero-padded projection weight).
    return out_p[..., :C]


# --------------------------- pure-JAX reference (for checking) -------------------------
def self_attention_ref(x, w1_t, w2_t):
    B, T, C = x.shape
    H, D = config.num_head, config.head_size
    xn = x * jax.lax.rsqrt(jnp.mean(x * x, axis=-1, keepdims=True) + 1e-6)
    qkv = xn @ w1_t
    q, k, v = jnp.split(qkv, 3, axis=-1)
    q = q.reshape(B, T, H, D).transpose(0, 2, 1, 3)
    k = k.reshape(B, T, H, D).transpose(0, 2, 1, 3)
    v = v.reshape(B, T, H, D).transpose(0, 2, 1, 3)
    s = jnp.einsum('bhtd,bhsd->bhts', q, k) / math.sqrt(D)
    if config.enable_causal_mode:
        mask = jnp.tril(jnp.ones((T, T), dtype=bool))
        s = jnp.where(mask[None, None], s, -jnp.inf)
    p = jax.nn.softmax(s, axis=-1)
    y = jnp.einsum('bhts,bhsd->bhtd', p, v)
    y = y.transpose(0, 2, 1, 3).reshape(B, T, C)
    return y @ w2_t


# -------------------------------------- main --------------------------------------------
if __name__ == "__main__":
    B, T, C = 2, 8, config.emb_size

    key = jax.random.PRNGKey(0)
    kx, k1, k2 = jax.random.split(key, 3)

    x = jax.random.normal(kx, (B, T, C), dtype=jnp.float32)

    # nn.init.normal_(fc_1.weight, std=0.02): PyTorch weight shape (3C, C);
    # store transposed (C, 3C) so the kernel computes x @ W1_t == x @ fc_1.weight.T
    w1 = 0.02 * jax.random.normal(k1, (3 * C, C), dtype=jnp.float32)
    w1_t = w1.T
    # nn.init.normal_(fc_2.weight, std=0.02/sqrt(2*num_block)): shape (C, C)
    w2 = (0.02 / math.sqrt(2 * config.num_block)) * jax.random.normal(
        k2, (C, C), dtype=jnp.float32)
    w2_t = w2.T

    out = self_attention(x, w1_t, w2_t)
    out = jax.block_until_ready(out)

    ref = self_attention_ref(x, w1_t, w2_t)
    assert out.shape == (B, T, C)
    # bf16 MXU operands + approx EUP reciprocal perturb results at the ~1e-3 relative
    # level (f32 accumulation kept); acceptable for inference.
    assert jnp.allclose(out, ref, atol=2e-3, rtol=2e-2), "mismatch vs JAX reference"

    print("KERNEL_OK")
</pallas_src>

<mosaic_0001>
module attributes {stable_mosaic.version = 11 : i64} {
  func.func @_self_attention_kernel(%arg0: i32, %arg1: memref<2x8x128xf32, #tpu.memory_space<vmem>>, %arg2: memref<160x128xbf16, #tpu.memory_space<vmem>>, %arg3: memref<2x8x128xf32, #tpu.memory_space<vmem>>) attributes {dimension_semantics = [#tpu.dimension_semantics<parallel>], iteration_bounds = array<i64: 1>, scalar_prefetch = 0 : i64, scratch_operands = 0 : i64, tpu.core_type = #tpu.core_type<tc>, window_params = [{transform_indices = @transform_0, window_bounds = array<i64: 2, 8, 128>}, {pipeline_mode = #tpu.pipeline_mode<synchronous>, transform_indices = @transform_1, window_bounds = array<i64: 160, 128>}, {transform_indices = @transform_2, window_bounds = array<i64: 2, 8, 128>}]} {
    %c0 = arith.constant 0 : index
    %c0_0 = arith.constant 0 : index
    %c0_1 = arith.constant 0 : index
    %0 = vector.load %arg1[%c0, %c0_0, %c0_1] : memref<2x8x128xf32, #tpu.memory_space<vmem>>, vector<2x8x128xf32>
    %1 = vector.shape_cast %0 : vector<2x8x128xf32> to vector<16x128xf32>
    %2 = arith.mulf %1, %1 : vector<16x128xf32>
    %cst = arith.constant dense<0.000000e+00> : vector<16xf32>
    %3 = vector.multi_reduction <add>, %2, %cst [1] : vector<16x128xf32> to vector<16xf32>
    %4 = vector.shape_cast %3 : vector<16xf32> to vector<16x1xf32>
    %cst_2 = arith.constant 3.125000e-02 : f32
    %5 = vector.broadcast %cst_2 : f32 to vector<16x1xf32>
    %6 = arith.mulf %4, %5 : vector<16x1xf32>
    %cst_3 = arith.constant 9.99999997E-7 : f32
    %7 = vector.broadcast %cst_3 : f32 to vector<16x1xf32>
    %8 = arith.addf %6, %7 : vector<16x1xf32>
    %9 = math.rsqrt %8 : vector<16x1xf32>
    %10 = vector.broadcast %9 : vector<16x1xf32> to vector<16x128xf32>
    %11 = arith.mulf %1, %10 : vector<16x128xf32>
    %12 = arith.truncf %11 : vector<16x128xf32> to vector<16x128xbf16>
    %c0_4 = arith.constant 0 : index
    %c0_5 = arith.constant 0 : index
    %13 = vector.load %arg2[%c0_4, %c0_5] : memref<160x128xbf16, #tpu.memory_space<vmem>>, vector<160x128xbf16>
    %14 = vector.extract_strided_slice %13 {offsets = [0, 0], sizes = [128, 128], strides = [1, 1]} : vector<160x128xbf16> to vector<128x128xbf16>
    %15 = vector.extract_strided_slice %13 {offsets = [128, 0], sizes = [32, 128], strides = [1, 1]} : vector<160x128xbf16> to vector<32x128xbf16>
    %cst_6 = arith.constant dense<0.000000e+00> : vector<16x128xf32>
    %16 = tpu.matmul %12, %14, %cst_6 {dimension_numbers = #tpu.dot_dimension_numbers<[1], [0], [0], [1], [0, 0, 1, 1], [], []>} : vector<16x128xbf16>, vector<128x128xbf16>, vector<16x128xf32> -> vector<16x128xf32>
    %17 = arith.truncf %16 : vector<16x128xf32> to vector<16x128xbf16>
    %18 = vector.extract_strided_slice %17 {offsets = [0, 0], sizes = [16, 32], strides = [1, 1]} : vector<16x128xbf16> to vector<16x32xbf16>
    %19 = vector.shape_cast %18 : vector<16x32xbf16> to vector<2x8x4x8xbf16>
    %20 = tpu.transpose %19, [0, 2, 1, 3] : vector<2x8x4x8xbf16> -> vector<2x4x8x8xbf16>
    %21 = vector.shape_cast %20 : vector<2x4x8x8xbf16> to vector<8x8x8xbf16>
    %22 = vector.extract_strided_slice %17 {offsets = [0, 32], sizes = [16, 32], strides = [1, 1]} : vector<16x128xbf16> to vector<16x32xbf16>
    %23 = vector.shape_cast %22 : vector<16x32xbf16> to vector<2x8x4x8xbf16>
    %24 = tpu.transpose %23, [0, 2, 1, 3] : vector<2x8x4x8xbf16> -> vector<2x4x8x8xbf16>
    %25 = vector.shape_cast %24 : vector<2x4x8x8xbf16> to vector<8x8x8xbf16>
    %26 = vector.extract_strided_slice %17 {offsets = [0, 64], sizes = [16, 32], strides = [1, 1]} : vector<16x128xbf16> to vector<16x32xbf16>
    %27 = vector.shape_cast %26 : vector<16x32xbf16> to vector<2x8x4x8xbf16>
    %28 = tpu.transpose %27, [0, 2, 1, 3] : vector<2x8x4x8xbf16> -> vector<2x4x8x8xbf16>
    %29 = vector.shape_cast %28 : vector<2x4x8x8xbf16> to vector<8x8x8xbf16>
    "tpu.trace_start"() <{level = 10 : i32, message = "ztd,zsd->zts"}> : () -> ()
    %cst_7 = arith.constant dense<0.000000e+00> : vector<8x8x8xf32>
    %30 = tpu.matmul %21, %25, %cst_7 {dimension_numbers = #tpu.dot_dimension_numbers<[2], [2], [1], [1], [0, 0, 0, 1, 1, 1], [0], [0]>} : vector<8x8x8xbf16>, vector<8x8x8xbf16>, vector<8x8x8xf32> -> vector<8x8x8xf32>
    "tpu.trace_stop"() : () -> ()
    %31 = tpu.iota {dimensions = array<i32: 0>} : vector<8x8xi32>
    %32 = tpu.iota {dimensions = array<i32: 1>} : vector<8x8xi32>
    %33 = arith.cmpi sge, %31, %32 : vector<8x8xi32>
    %cst_8 = arith.constant 0.000000e+00 : f32
    %cst_9 = arith.constant -1.000000e+30 : f32
    %34 = vector.broadcast %cst_8 : f32 to vector<8x8xf32>
    %35 = vector.broadcast %cst_9 : f32 to vector<8x8xf32>
    %36 = arith.select %33, %34, %35 : vector<8x8xi1>, vector<8x8xf32>
    %37 = vector.shape_cast %36 : vector<8x8xf32> to vector<1x8x8xf32>
    %38 = vector.broadcast %37 : vector<1x8x8xf32> to vector<8x8x8xf32>
    %39 = arith.addf %30, %38 : vector<8x8x8xf32>
    %cst_10 = arith.constant dense<0xFF800000> : vector<8x8xf32>
    %40 = vector.multi_reduction <maximumf>, %39, %cst_10 [2] : vector<8x8x8xf32> to vector<8x8xf32>
    %41 = vector.shape_cast %40 : vector<8x8xf32> to vector<8x8x1xf32>
    %42 = vector.broadcast %41 : vector<8x8x1xf32> to vector<8x8x8xf32>
    %43 = arith.subf %39, %42 : vector<8x8x8xf32>
    %44 = math.exp %43 : vector<8x8x8xf32>
    %cst_11 = arith.constant dense<0.000000e+00> : vector<8x8xf32>
    %45 = vector.multi_reduction <add>, %44, %cst_11 [2] : vector<8x8x8xf32> to vector<8x8xf32>
    %46 = vector.shape_cast %45 : vector<8x8xf32> to vector<8x8x1xf32>
    %47 = tpu.reciprocal %46 {approx = true} : vector<8x8x1xf32> -> vector<8x8x1xf32>
    %48 = vector.broadcast %47 : vector<8x8x1xf32> to vector<8x8x8xf32>
    %49 = arith.mulf %44, %48 : vector<8x8x8xf32>
    %50 = arith.truncf %49 : vector<8x8x8xf32> to vector<8x8x8xbf16>
    "tpu.trace_start"() <{level = 10 : i32, message = "zts,zsd->ztd"}> : () -> ()
    %cst_12 = arith.constant dense<0.000000e+00> : vector<8x8x8xf32>
    %51 = tpu.matmul %50, %29, %cst_12 {dimension_numbers = #tpu.dot_dimension_numbers<[2], [1], [1], [2], [0, 0, 0, 1, 1, 2], [0], [0]>} : vector<8x8x8xbf16>, vector<8x8x8xbf16>, vector<8x8x8xf32> -> vector<8x8x8xf32>
    "tpu.trace_stop"() : () -> ()
    %52 = vector.shape_cast %51 : vector<8x8x8xf32> to vector<2x4x8x8xf32>
    %53 = tpu.transpose %52, [0, 2, 1, 3] : vector<2x4x8x8xf32> -> vector<2x8x4x8xf32>
    %54 = vector.shape_cast %53 : vector<2x8x4x8xf32> to vector<16x32xf32>
    %55 = arith.truncf %54 : vector<16x32xf32> to vector<16x32xbf16>
    %cst_13 = arith.constant dense<0.000000e+00> : vector<16x128xf32>
    %56 = tpu.matmul %55, %15, %cst_13 {dimension_numbers = #tpu.dot_dimension_numbers<[1], [0], [0], [1], [0, 0, 1, 1], [], []>} : vector<16x32xbf16>, vector<32x128xbf16>, vector<16x128xf32> -> vector<16x128xf32>
    %57 = vector.shape_cast %56 : vector<16x128xf32> to vector<2x8x128xf32>
    %c0_14 = arith.constant 0 : index
    %c0_15 = arith.constant 0 : index
    %c0_16 = arith.constant 0 : index
    %58 = vector.load %arg3[%c0_14, %c0_15, %c0_16] : memref<2x8x128xf32, #tpu.memory_space<vmem>>, vector<2x8x128xf32>
    tpu.vector_store %arg3[%c0_14, %c0_15, %c0_16], %57 {strides = array<i32>} : memref<2x8x128xf32, #tpu.memory_space<vmem>>, vector<2x8x128xf32>,
    return
  }
  func.func @transform_0(%arg0: i32) -> (i32, i32, i32) {
    %c0_i32 = arith.constant 0 : i32
    %c0_i32_0 = arith.constant 0 : i32
    %c0_i32_1 = arith.constant 0 : i32
    return %arg0, %c0_i32, %c0_i32_0 : i32, i32, i32
  }
  func.func @transform_1(%arg0: i32) -> (i32, i32) {
    %c0_i32 = arith.constant 0 : i32
    %c0_i32_0 = arith.constant 0 : i32
    %c0_i32_1 = arith.constant 0 : i32
    return %c0_i32, %c0_i32_0 : i32, i32
  }
  func.func @transform_2(%arg0: i32) -> (i32, i32, i32) {
    %c0_i32 = arith.constant 0 : i32
    %c0_i32_0 = arith.constant 0 : i32
    %c0_i32_1 = arith.constant 0 : i32
    return %arg0, %c0_i32, %c0_i32_0 : i32, i32, i32
  }
}

</mosaic_0001>

<bundles_post_ra>
// kernel: tpu_custom_call.1
= control target key start
LH: loop header
LB: loop body
LE: loop exit
PB: predicated region body
PF: predicated region fallthrough
CT: control target
= control target key end

     0   :  { %7 = vsyncpa [#allocation3], 0  ;;  %s2346_s0 = inlined_call_operand.hbm [shape: f32[2,8,128], index: 0, kind: input, shape index: {}]   ;;  %s2347_s1 = inlined_call_operand.hbm [shape: bf16[160,128], index: 1, kind: input, shape index: {}]   ;;  %s2348_s2 = inlined_call_operand.hbm [shape: f32[2,8,128], index: 2, kind: output, shape index: {}]  }
   0x1   :  { %8 = vsyncpa [#allocation6], 0 }
   0x2   :  { %9 = vsyncpa [#allocation4], 0  ;;  %s14_s11 = sshll.u32 %s2346_s0, 4  ;;  %s1821_s12 = smov [#allocation2]   ;;  %s15_s11 = int_to_ptr.hbm [resolvable:$true] %s14_s11 }
   0x3   :  { %s16_s13 = sshll.u32 %s1821_s12, 4  ;;  %s27_s16 = sshll.u32 %s2347_s1, 4  ;;  %s17_s13 = int_to_ptr.vmem [resolvable:$true] %s16_s13  ;;  %s28_s16 = int_to_ptr.hbm [resolvable:$true] %s27_s16 }
   0x4   :  { %s1822_s17 = smov 128   ;;  %s1823_s18 = smov 8  }
   0x5   :  { %22 = dma.hbm_to_vmem [thread:$0]  %s15_s11, 256, %s17_s13, [#allocation3], %s1822_s17, %s1822_s17, %s1823_s18  }
   0x6   :  { %s1824_s19 = smov [#allocation5]   ;;  %s1825_s21 = smov 64  }
   0x7   :  { %s29_s20 = sshll.u32 %s1824_s19, 4  ;;  %s1826_s0 = smov 4   ;;  %s30_s20 = int_to_ptr.vmem [resolvable:$true] %s29_s20 }
   0x8   :  { %35 = dma.hbm_to_vmem [thread:$0]  %s28_s16, 1280, %s30_s20, [#allocation6], %s1825_s21, %s1825_s21, %s1826_s0  }
   0x9   :  { %1815 = dma.done.wait [#allocation3], 256  }
   0xa   :  { %1816 = vsyncadd [#allocation3], 4294967040 }
   0xb   :  { %1817 = dma.done.wait [#allocation6], 1280  }
   0xc   :  { %1818 = vsyncadd [#allocation6], 4294966016  ;;  %v45_v0 = vld [vmem:[#allocation2] sm:$0xff]  ;;  %v46_v2 = vld [vmem:[#allocation2 + $0x8] sm:$0xff]  ;;  %s1827_s1 = smov 104   ;;  %s1828_s22 = smov 120  }
   0xd   :  { %v47_v1 = vmul.f32 %v45_v0, %v45_v0  ;;  %v48_v3 = vmul.f32 %v46_v2, %v46_v2  ;;  %v1673_v4 = vld [vmem:[#allocation5 + $0x38] sm:$0xff]  ;;  %v1672_v5 = vld [vmem:[#allocation5 + $0x30] sm:$0xff]  ;;  %v1671_v6 = vld [vmem:[#allocation5 + $0x28] sm:$0xff]  ;;  %s1829_s23 = smov 112   ;;  %s1830_s24 = smov 96   ;;  %vm213_vm6 = vcmask 1047556  }
   0xe   :  { %148 = vmatpush.bf16.msra.mxu0 %v1673_v4  ;;  %v1670_v7 = vld [vmem:[#allocation5 + $0x20] sm:$0xff]  ;;  %v1669_v8 = vld [vmem:[#allocation5 + $0x18] sm:$0xff]  ;;  %v1668_v9 = vld [vmem:[#allocation5 + $0x10] sm:$0xff]  ;;  %v1831_v42 = vmov 1983009808   ;;  %vm901_vm7 = vcmask 64512  }
   0xf   :  { %49 = vadd.xlane.f32.xlu0 %v47_v1  ;;  %v1667_v10 = vld [vmem:[#allocation5 + $0x8] sm:$0xff]  ;;  %v1666_v11 = vld [vmem:[#allocation5] sm:$0xff]  ;;  %v204_v43 = vunpack.c.l.s4 %v1831_v42  ;;  %v1832_v49 = vmov 1934713408   ;;  %vm1153_vm8 = vcmask 1043456   ;;  %s1834_s25 = smov 16  }
  0x10   :  { %v218_v50 = vunpack.c.l.s4 %v1832_v49  ;;  %s1835_s26 = smov 24   ;;  %vm1550_vm10 = vcmask 130048   ;;  %vm1553_vm11 = vcmask 195584   ;;  %vm1569_vm12 = vcmask 261120   ;;  %s1836_s27 = smov [#allocation7]  }
  0x11   :  { %v1883_v47 = vunpack.c.0.s8 %v204_v43  ;;  %s1593_s28 = sshll.u32 %s1836_s27, 4  ;;  %s1595_s3 = sshll.u32 %s2348_s2, 4  ;;  %s1594_s28 = int_to_ptr.vmem [resolvable:$true] %s1593_s28  ;;  %s1596_s3 = int_to_ptr.hbm [resolvable:$true] %s1595_s3 }
  0x12   :  { %149 = vmatpush.bf16.msra.mxu0 %v1672_v5  ;;  %v1889_v57 = vunpack.c.0.s8 %v218_v50 }
  0x16   :  { %150 = vmatpush.bf16.msra.mxu0 %v1671_v6 }
  0x17   :  { %51 = vadd.xlane.f32.xlu0 %v48_v3 }
  0x1a   :  { %151 = vmatpush.bf16.msra.mxu0 %v1670_v7 }
  0x1e   :  { %152 = vmatpush.bf16.msra.mxu0 %v1669_v8 }
  0x22   :  { %153 = vmatpush.bf16.msra.mxu0 %v1668_v9 }
  0x26   :  { %154 = vmatpush.bf16.msra.mxu0 %v1667_v10 }
  0x2a   :  { %155 = vmatpush.bf16.msra.mxu0 %v1666_v11 }
  0x82   :  { %v50_v12 = vpop.xlane.xlu0 %49 }
  0x83   :  { %v53_v13 = vmul.f32 0.03125, %v50_v12 }
  0x85   :  { %v55_v14 = vadd.f32 1e-06, %v53_v13 }
  0x87   :  { %1707 = vrsqrt.f32 %v55_v14  ;;  %vm63_vm1 = vweird.f32 %v55_v14 }
  0x8a   :  { %v52_v15 = vpop.xlane.xlu0 %51 }
  0x8b   :  { %v54_v16 = vmul.f32 0.03125, %v52_v15 }
  0x8d   :  { %v1708_v17 = vpop.eup %1707  ;;  %v56_v18 = vadd.f32 1e-06, %v54_v16 }
  0x8e   :  { %v58_v19 = vmul.f32 %v1708_v17, %v55_v14  ;;  %vm64_vm0 = vweird.f32 %v1708_v17 }
  0x8f   :  { %1709 = vrsqrt.f32 %v56_v18  ;;  %vm65_vm3 = vmor %vm63_vm1, %vm64_vm0  ;;  %vm73_vm4 = vweird.f32 %v56_v18 }
  0x90   :  { %v59_v20 = vmul.f32 %v1708_v17, %v58_v19 }
  0x92   :  { %v60_v21 = vmul.f32 0.5, %v59_v20 }
  0x94   :  { %v61_v23 = vsub.f32 1.5, %v60_v21 }
  0x95   :  { %v1710_v22 = vpop.eup %1709 }
  0x96   :  { %v68_v24 = vmul.f32 %v1710_v22, %v56_v18  ;;  %v62_v27 = vmul.f32 %v1708_v17, %v61_v23  ;;  %vm74_vm2 = vweird.f32 %v1710_v22 }
  0x97   :  { %vm75_vm5 = vmor %vm73_vm4, %vm74_vm2 }
  0x98   :  { %v69_v25 = vmul.f32 %v1710_v22, %v68_v24  ;;  %v66_v29 = vsel %vm65_vm3, %v1708_v17, %v62_v27 }
  0x99   :  { %v77_v32 = vmul.f32 %v66_v29, %v45_v0 }
  0x9a   :  { %v70_v26 = vmul.f32 0.5, %v69_v25 }
  0x9c   :  { %v71_v28 = vsub.f32 1.5, %v70_v26 }
  0x9e   :  { %v72_v30 = vmul.f32 %v1710_v22, %v71_v28 }
  0xa0   :  { %v76_v31 = vsel %vm75_vm5, %v1710_v22, %v72_v30 }
  0xa1   :  { %v78_v33 = vmul.f32 %v76_v31, %v46_v2 }
  0xa3   :  { %v79_v34 = vpack.c.bf16 %v78_v33, %v77_v32 }
  0xa5   :  { %156 = vmatmul.bf16.vlgmr.msra.gmra.mxu0 %v79_v34 }
 0x122   :  { %v157_v35 = vpop.f32.mrf.mxu0 }
 0x123   :  { %v1863_v36 = vpack.c.bf16 %v157_v35, %v157_v35 }
 0x125   :  { %174 = vrot.lane.b32.xlu2 %v1863_v36, %s1827_s1  ;;  %166 = vrot.lane.b32.xlu1 %v1863_v36, %s1828_s22  ;;  %v181_v46 = vshrl.u32 %v1863_v36, 16 }
 0x12a   :  { %v159_v37 = vpop.f32.mrf.mxu0 }
 0x12b   :  { %v1867_v38 = vpack.c.bf16 %v159_v37, %v159_v37 }
 0x12d   :  { %170 = vrot.lane.b32.xlu1 %v1863_v36, %s1829_s23  ;;  %172 = vrot.lane.b32.xlu0 %v1867_v38, %s1829_s23 }
 0x12e   :  { %168 = vrot.lane.b32.xlu2 %v1867_v38, %s1828_s22 }
 0x135   :  { %176 = vrot.lane.b32.xlu1 %v1867_v38, %s1827_s1 }
 0x136   :  { %407 = vrot.lane.b32.xlu2 %v1863_v36, %s1830_s24 }
 0x17f   :  { %v175_v39 = vpop.permute.xlu2 %174 }
 0x180   :  { %v188_v53 = vshrl.u32 %v175_v39, 16 }
 0x188   :  { %v1875_v40 = vpop.permute.xlu2 %168 }
 0x189   :  { %413 = vrot.lane.b32.xlu0 %v1875_v40, %s1830_s24 }
 0x190   :  { %v408_v50 = vpop.permute.xlu2 %407 }
 0x197   :  { %v167_v41 = vpop.permute.xlu1 %166 }
 0x198   :  { %v182_v44 = vshrl.u32 %v167_v41, 16  ;;  %411 = vrot.lane.b32.xlu1 %v167_v41, %s1830_s24  ;;  %655 = vrot.lane.b32.xlu0 %v167_v41, %s1825_s21  ;;  %v180_v45 = vpack.i.b16 %v167_v41, %v1863_v36 }
 0x19a   :  { %v183_v48 = vpack.i.b16 %v182_v44, %v181_v46  ;;  %v206_v51 = vperm.slane %v180_v45, %v1883_v47 }
 0x19c   :  { %v233_v54 = vperm.slane %v183_v48, %v1883_v47  ;;  %v215_v58 = vrot.slane %v206_v51, 4 }
 0x19e   :  { %v241_v61 = vrot.slane %v233_v54, 4 }
 0x19f   :  { %v171_v52 = vpop.permute.xlu1 %170  ;;  %v1900_v8 = vpop.permute.xlu0 %172 }
 0x1a0   :  { %v186_v55 = vpack.i.b16 %v175_v39, %v171_v52  ;;  %v187_v56 = vshrl.u32 %v171_v52, 16  ;;  %419 = vrot.lane.b32.xlu1 %v175_v39, %s1830_s24  ;;  %415 = vrot.lane.b32.xlu2 %v171_v52, %s1830_s24 }
 0x1a1   :  { %663 = vrot.lane.b32.xlu0 %v175_v39, %s1825_s21 }
 0x1a2   :  { %v189_v59 = vpack.i.b16 %v188_v53, %v187_v56  ;;  %v211_v60 = vperm.slane %v186_v55, %v1883_v47  ;;  %v199_v56 = vshrl.u32 %v1900_v8, 16 }
 0x1a4   :  { %v212_v62 = vrot.slane %v211_v60, 4  ;;  %v216_v63 = vsel %vm213_vm6, %v211_v60, %v215_v58  ;;  %v238_v0 = vperm.slane %v189_v59, %v1883_v47 }
 0x1a5   :  { %v224_v1 = vperm.slane %v216_v63, %v1889_v57 }
 0x1a6   :  { %v214_v2 = vsel %vm213_vm6, %v212_v62, %v206_v51  ;;  %v239_v3 = vrot.slane %v238_v0, 4  ;;  %v242_v4 = vsel %vm213_vm6, %v238_v0, %v241_v61  ;;  %v192_v51 = vpack.i.b16 %v1875_v40, %v1867_v38 }
 0x1a7   :  { %v220_v5 = vperm.slane %v214_v2, %v1889_v57  ;;  %v227_v6 = vrot.slane %v224_v1, 4  ;;  %v250_v7 = vperm.slane %v242_v4, %v1889_v57  ;;  %v1916_v24 = vpop.permute.xlu1 %176 }
 0x1a8   :  { %v240_v9 = vsel %vm213_vm6, %v239_v3, %v233_v54  ;;  %417 = vrot.lane.b32.xlu1 %v1900_v8, %s1830_s24  ;;  %409 = vrot.lane.b32.xlu2 %v1867_v38, %s1830_s24  ;;  %v200_v53 = vshrl.u32 %v1916_v24, 16  ;;  %v193_v54 = vshrl.u32 %v1867_v38, 16  ;;  %v198_v55 = vpack.i.b16 %v1916_v24, %v1900_v8 }
 0x1a9   :  { %v225_v10 = vrot.slane %v220_v5, 4  ;;  %v228_v11 = vsel %vm213_vm6, 0, %v227_v6  ;;  %v246_v12 = vperm.slane %v240_v9, %v1889_v57  ;;  %v253_v13 = vrot.slane %v250_v7, 4 }
 0x1aa   :  { %v312_v14 = vrot.slane %v228_v11, 4  ;;  %v307_v15 = vsel %vm213_vm6, %v227_v6, %v220_v5  ;;  %v259_v59 = vperm.slane %v192_v51, %v1883_v47  ;;  %v201_v61 = vpack.i.b16 %v200_v53, %v199_v56 }
 0x1ab   :  { %v251_v16 = vrot.slane %v246_v12, 4  ;;  %v254_v17 = vsel %vm213_vm6, 0, %v253_v13  ;;  %v226_v18 = vsel %vm213_vm6, 0, %v225_v10  ;;  %v326_v22 = vsel %vm213_vm6, %v253_v13, %v246_v12 }
 0x1ac   :  { %v331_v19 = vrot.slane %v254_v17, 4  ;;  %v313_v21 = vsel %vm213_vm6, %v312_v14, %v226_v18  ;;  %v311_v25 = vperm.slane %v307_v15, %v1883_v47  ;;  %v330_v31 = vperm.slane %v326_v22, %v1883_v47 }
 0x1ad   :  { %v252_v20 = vsel %vm213_vm6, 0, %v251_v16  ;;  %v317_v23 = vperm.slane %v313_v21, %v1883_v47  ;;  %v264_v62 = vperm.slane %v198_v55, %v1883_v47  ;;  %v267_v63 = vrot.slane %v259_v59, 4 }
 0x1ae   :  { %v332_v27 = vsel %vm213_vm6, %v331_v19, %v252_v20  ;;  %v290_v1 = vperm.slane %v201_v61, %v1883_v47 }
 0x1af   :  { %v318_v26 = vrot.slane %v317_v23, 4  ;;  %v336_v29 = vperm.slane %v332_v27, %v1883_v47  ;;  %v265_v2 = vrot.slane %v264_v62, 4 }
 0x1b0   :  { %651 = vrot.lane.b32.xlu1 %v1863_v36, %s1825_s21  ;;  %421 = vrot.lane.b32.xlu2 %v1916_v24, %s1830_s24  ;;  %v291_v7 = vrot.slane %v290_v1, 4 }
 0x1b1   :  { %v319_v28 = vsel %vm213_vm6, %v318_v26, %v311_v25  ;;  %v337_v32 = vrot.slane %v336_v29, 4  ;;  %v266_v9 = vsel %vm213_vm6, %v265_v2, %v259_v59  ;;  %v426_v25 = vshrl.u32 %v408_v50, 16 }
 0x1b2   :  { %v1927_v30 = vperm.slane %v319_v28, %v1889_v57  ;;  %v1974_v11 = vperm.slane %v266_v9, %v1889_v57 }
 0x1b3   :  { %v338_v34 = vsel %vm213_vm6, %v337_v32, %v330_v31 }
 0x1b4   :  { %v324_v33 = vrot.slane %v1927_v30, 4  ;;  %v1933_v35 = vperm.slane %v338_v34, %v1889_v57  ;;  %v386_v36 = vshrl.u32 %v1927_v30, 16  ;;  %v277_v18 = vrot.slane %v1974_v11, 4 }
 0x1b6   :  { %v385_v37 = vpack.i.b16 %v1933_v35, %v1927_v30  ;;  %v387_v39 = vshrl.u32 %v1933_v35, 16  ;;  %v1943_v41 = vsel %vm213_vm6, 0, %v324_v33  ;;  %v343_v42 = vrot.slane %v1933_v35, 4 }
 0x1b7   :  { %v392_v46 = vshrl.u32 %v1943_v41, 16  ;;  %v278_v31 = vsel %vm213_vm6, 0, %v277_v18 }
 0x1b8   :  { %653 = vrot.lane.b32.xlu1 %v1867_v38, %s1825_s21  ;;  %659 = vrot.lane.b32.xlu2 %v171_v52, %s1825_s21  ;;  %v1946_v43 = vpack.i.b16 %v387_v39, %v386_v36  ;;  %v1949_v44 = vsel %vm213_vm6, 0, %v343_v42  ;;  %v194_v52 = vshrl.u32 %v1875_v40, 16  ;;  %v268_v38 = vsel %vm213_vm6, %v264_v62, %v267_v63 }
 0x1b9   :  { %v391_v45 = vpack.i.b16 %v1949_v44, %v1943_v41  ;;  %v393_v48 = vshrl.u32 %v1949_v44, 16  ;;  %v276_v6 = vperm.slane %v268_v38, %v1889_v57 }
 0x1ba   :  { %v195_v58 = vpack.i.b16 %v194_v52, %v193_v54 }
 0x1bb   :  { %v1955_v49 = vpack.i.b16 %v393_v48, %v392_v46  ;;  %v1976_v12 = vrot.slane %v276_v6, 4 }
 0x1bc   :  { %v285_v0 = vperm.slane %v195_v58, %v1883_v47 }
 0x1bd   :  { %v280_v19 = vsel %vm213_vm6, 0, %v1976_v12 }
 0x1be   :  { %v293_v3 = vrot.slane %v285_v0, 4  ;;  %v292_v13 = vsel %vm213_vm6, %v291_v7, %v285_v0  ;;  %v350_v28 = vrot.slane %v280_v19, 4 }
 0x1bf   :  { %v1981_v15 = vperm.slane %v292_v13, %v1889_v57 }
 0x1c0   :  { %v294_v10 = vsel %vm213_vm6, %v290_v1, %v293_v3 }
 0x1c1   :  { %v302_v14 = vperm.slane %v294_v10, %v1889_v57  ;;  %v303_v27 = vrot.slane %v1981_v15, 4 }
 0x1c3   :  { %v1988_v20 = vrot.slane %v302_v14, 4  ;;  %v304_v48 = vsel %vm213_vm6, 0, %v303_v27 }
 0x1c5   :  { %v306_v32 = vsel %vm213_vm6, 0, %v1988_v20 }
 0x1c6   :  { %v369_v42 = vrot.slane %v306_v32, 4 }
 0x1c8   :  { %v2009_v13 = vsel %vm213_vm6, %v369_v42, %v304_v48 }
 0x1fa   :  { %v416_v60 = vpop.permute.xlu2 %415 }
 0x1fb   :  { %v414_v4 = vpop.permute.xlu0 %413  ;;  %v432_v51 = vshrl.u32 %v416_v60, 16 }
 0x1fc   :  { %v439_v29 = vshrl.u32 %v414_v4, 16 }
 0x202   :  { %v410_v5 = vpop.permute.xlu2 %409 }
 0x203   :  { %v438_v23 = vshrl.u32 %v410_v5, 16  ;;  %v437_v34 = vpack.i.b16 %v414_v4, %v410_v5 }
 0x205   :  { %v440_v36 = vpack.i.b16 %v439_v29, %v438_v23  ;;  %v503_v58 = vperm.slane %v437_v34, %v1883_v47 }
 0x207   :  { %v529_v59 = vperm.slane %v440_v36, %v1883_v47  ;;  %v511_v7 = vrot.slane %v503_v58, 4 }
 0x209   :  { %v537_v9 = vrot.slane %v529_v59, 4 }
 0x20a   :  { %v412_v16 = vpop.permute.xlu1 %411  ;;  %v1983_v17 = vpop.permute.xlu0 %655 }
 0x20b   :  { %v427_v21 = vshrl.u32 %v412_v16, 16  ;;  %v422_v22 = vpop.permute.xlu2 %421  ;;  %v425_v26 = vpack.i.b16 %v412_v16, %v408_v50  ;;  %v1997_v50 = vsel %vm213_vm6, %v350_v28, %v278_v31 }
 0x20c   :  { %v355_v3 = vperm.slane %v1997_v50, %v1883_v47  ;;  %v445_v28 = vshrl.u32 %v422_v22, 16 }
 0x20d   :  { %v428_v33 = vpack.i.b16 %v427_v21, %v426_v25  ;;  %v451_v39 = vperm.slane %v425_v26, %v1883_v47 }
 0x20f   :  { %v477_v52 = vperm.slane %v428_v33, %v1883_v47  ;;  %v459_v63 = vrot.slane %v451_v39, 4 }
 0x211   :  { %v485_v4 = vrot.slane %v477_v52, 4 }
 0x212   :  { %v420_v46 = vpop.permute.xlu1 %419 }
 0x213   :  { %v431_v53 = vpack.i.b16 %v420_v46, %v416_v60  ;;  %v433_v54 = vshrl.u32 %v420_v46, 16  ;;  %v664_v55 = vpop.permute.xlu0 %663  ;;  %v660_v56 = vpop.permute.xlu2 %659 }
 0x214   :  { %v677_v61 = vshrl.u32 %v664_v55, 16  ;;  %v676_v62 = vshrl.u32 %v660_v56, 16  ;;  %v675_v2 = vpack.i.b16 %v664_v55, %v660_v56 }
 0x215   :  { %v434_v0 = vpack.i.b16 %v433_v54, %v432_v51  ;;  %v456_v1 = vperm.slane %v431_v53, %v1883_v47  ;;  %v671_v53 = vshrl.u32 %v1983_v17, 16 }
 0x216   :  { %v678_v38 = vpack.i.b16 %v677_v61, %v676_v62  ;;  %v2014_v19 = vperm.slane %v675_v2, %v1883_v47 }
 0x217   :  { %v457_v60 = vrot.slane %v456_v1, 4  ;;  %v460_v5 = vsel %vm213_vm6, %v456_v1, %v459_v63  ;;  %v482_v6 = vperm.slane %v434_v0, %v1883_v47 }
 0x218   :  { %v468_v10 = vperm.slane %v460_v5, %v1889_v57  ;;  %v2019_v26 = vperm.slane %v678_v38, %v1883_v47 }
 0x219   :  { %v458_v14 = vsel %vm213_vm6, %v457_v60, %v451_v39  ;;  %v483_v16 = vrot.slane %v482_v6, 4  ;;  %v486_v18 = vsel %vm213_vm6, %v482_v6, %v485_v4 }
 0x21a   :  { %v464_v21 = vperm.slane %v458_v14, %v1889_v57  ;;  %v471_v23 = vrot.slane %v468_v10, 4  ;;  %v494_v25 = vperm.slane %v486_v18, %v1889_v57  ;;  %v418_v27 = vpop.permute.xlu1 %417 }
 0x21b   :  { %v484_v29 = vsel %vm213_vm6, %v483_v16, %v477_v52  ;;  %v443_v31 = vpack.i.b16 %v422_v22, %v418_v27  ;;  %v444_v32 = vshrl.u32 %v418_v27, 16  ;;  %v701_v52 = vrot.slane %v2014_v19, 4 }
 0x21c   :  { %v469_v33 = vrot.slane %v464_v21, 4  ;;  %v472_v34 = vsel %vm213_vm6, 0, %v471_v23  ;;  %v490_v36 = vperm.slane %v484_v29, %v1889_v57  ;;  %v497_v39 = vrot.slane %v494_v25, 4 }
 0x21d   :  { %v556_v42 = vrot.slane %v472_v34, 4  ;;  %v446_v46 = vpack.i.b16 %v445_v28, %v444_v32  ;;  %v508_v48 = vperm.slane %v443_v31, %v1883_v47  ;;  %v551_v51 = vsel %vm213_vm6, %v471_v23, %v464_v21 }
 0x21e   :  { %v470_v54 = vsel %vm213_vm6, 0, %v469_v33  ;;  %v727_v22 = vrot.slane %v2019_v26, 4  ;;  %v495_v55 = vrot.slane %v490_v36, 4  ;;  %v498_v63 = vsel %vm213_vm6, 0, %v497_v39 }
 0x21f   :  { %v509_v56 = vrot.slane %v508_v48, 4  ;;  %v512_v61 = vsel %vm213_vm6, %v508_v48, %v511_v7  ;;  %v534_v62 = vperm.slane %v446_v46, %v1883_v47  ;;  %v555_v1 = vperm.slane %v551_v51, %v1883_v47 }
 0x220   :  { %v520_v0 = vperm.slane %v512_v61, %v1889_v57  ;;  %v557_v2 = vsel %vm213_vm6, %v556_v42, %v470_v54  ;;  %v570_v16 = vsel %vm213_vm6, %v497_v39, %v490_v36  ;;  %v496_v32 = vsel %vm213_vm6, 0, %v495_v55 }
 0x221   :  { %v510_v38 = vsel %vm213_vm6, %v509_v56, %v503_v58  ;;  %v535_v4 = vrot.slane %v534_v62, 4  ;;  %v538_v60 = vsel %vm213_vm6, %v534_v62, %v537_v9  ;;  %v561_v5 = vperm.slane %v557_v2, %v1883_v47 }
 0x222   :  { %v516_v6 = vperm.slane %v510_v38, %v1889_v57  ;;  %v523_v7 = vrot.slane %v520_v0, 4  ;;  %v546_v10 = vperm.slane %v538_v60, %v1889_v57  ;;  %v652_v14 = vpop.permute.xlu1 %651  ;;  %v575_v58 = vrot.slane %v498_v63, 4 }
 0x223   :  { %v536_v18 = vsel %vm213_vm6, %v535_v4, %v529_v59  ;;  %v669_v21 = vpack.i.b16 %v1983_v17, %v652_v14  ;;  %v670_v23 = vshrl.u32 %v652_v14, 16  ;;  %v562_v25 = vrot.slane %v561_v5, 4 }
 0x224   :  { %v521_v27 = vrot.slane %v516_v6, 4  ;;  %v524_v9 = vsel %vm213_vm6, 0, %v523_v7  ;;  %v549_v28 = vrot.slane %v546_v10, 4  ;;  %v542_v34 = vperm.slane %v536_v18, %v1889_v57 }
 0x225   :  { %v672_v29 = vpack.i.b16 %v671_v53, %v670_v23  ;;  %v695_v31 = vperm.slane %v669_v21, %v1883_v47  ;;  %v563_v33 = vsel %vm213_vm6, %v562_v25, %v555_v1  ;;  %v594_v36 = vrot.slane %v524_v9, 4 }
 0x226   :  { %v567_v59 = vperm.slane %v563_v33, %v1889_v57  ;;  %v574_v17 = vperm.slane %v570_v16, %v1883_v47  ;;  %v522_v39 = vsel %vm213_vm6, 0, %v521_v27  ;;  %v550_v51 = vsel %vm213_vm6, 0, %v549_v28 }
 0x227   :  { %v702_v42 = vsel %vm213_vm6, %v701_v52, %v695_v31  ;;  %v703_v46 = vrot.slane %v695_v31, 4  ;;  %v721_v48 = vperm.slane %v672_v29, %v1883_v47  ;;  %v576_v54 = vsel %vm213_vm6, %v575_v58, %v496_v32 }
 0x228   :  { %v708_v53 = vperm.slane %v702_v42, %v1889_v57  ;;  %v568_v55 = vrot.slane %v567_v59, 4  ;;  %v580_v63 = vperm.slane %v576_v54, %v1883_v47  ;;  %v547_v38 = vrot.slane %v542_v34, 4 }
 0x229   :  { %v704_v56 = vsel %vm213_vm6, %v2014_v19, %v703_v46  ;;  %v728_v61 = vsel %vm213_vm6, %v727_v22, %v721_v48  ;;  %v729_v62 = vrot.slane %v721_v48, 4  ;;  %v613_v4 = vrot.slane %v550_v51, 4 }
 0x22a   :  { %v712_v52 = vperm.slane %v704_v56, %v1889_v57  ;;  %v713_v0 = vrot.slane %v708_v53, 4  ;;  %v734_v1 = vperm.slane %v728_v61, %v1889_v57  ;;  %v569_v2 = vsel %vm213_vm6, 0, %v568_v55 }
 0x22b   :  { %v730_v60 = vsel %vm213_vm6, %v2019_v26, %v729_v62  ;;  %v581_v5 = vrot.slane %v580_v63, 4  ;;  %v630_v14 = vshrl.u32 %v567_v59, 16  ;;  %v636_v18 = vshrl.u32 %v569_v2, 16 }
 0x22c   :  { %v715_v10 = vrot.slane %v712_v52, 4  ;;  %v738_v19 = vperm.slane %v730_v60, %v1889_v57  ;;  %v739_v22 = vrot.slane %v734_v1, 4  ;;  %v589_v21 = vsel %vm213_vm6, %v523_v7, %v516_v6 }
 0x22d   :  { %v582_v16 = vsel %vm213_vm6, %v581_v5, %v574_v17  ;;  %v595_v23 = vsel %vm213_vm6, %v594_v36, %v522_v39  ;;  %v714_v25 = vsel %vm213_vm6, 0, %v713_v0  ;;  %v548_v32 = vsel %vm213_vm6, 0, %v547_v38 }
 0x22e   :  { %v716_v58 = vsel %vm213_vm6, 0, %v715_v10  ;;  %v741_v27 = vrot.slane %v738_v19, 4  ;;  %v795_v26 = vsel %vm213_vm6, %v715_v10, %v708_v53  ;;  %v740_v9 = vsel %vm213_vm6, 0, %v739_v22 }
 0x22f   :  { %v800_v29 = vrot.slane %v716_v58, 4  ;;  %v586_v31 = vperm.slane %v582_v16, %v1889_v57  ;;  %v799_v6 = vperm.slane %v795_v26, %v1883_v47  ;;  %v593_v7 = vperm.slane %v589_v21, %v1883_v47 }
 0x230   :  { %v742_v33 = vsel %vm213_vm6, 0, %v741_v27  ;;  %v599_v36 = vperm.slane %v595_v23, %v1883_v47  ;;  %v608_v53 = vsel %vm213_vm6, %v549_v28, %v542_v34  ;;  %v614_v54 = vsel %vm213_vm6, %v613_v4, %v548_v32 }
 0x231   :  { %v801_v17 = vsel %vm213_vm6, %v800_v29, %v714_v25  ;;  %v819_v39 = vrot.slane %v742_v33, 4  ;;  %v629_v42 = vpack.i.b16 %v586_v31, %v567_v59  ;;  %v631_v46 = vshrl.u32 %v586_v31, 16 }
 0x232   :  { %v587_v48 = vrot.slane %v586_v31, 4  ;;  %v600_v51 = vrot.slane %v599_v36, 4  ;;  %v618_v61 = vperm.slane %v614_v54, %v1883_v47  ;;  %v805_v62 = vperm.slane %v801_v17, %v1883_v47 }
 0x233   :  { %v906_v55 = vsel %vm901_vm7, %v629_v42, 0  ;;  %v632_v56 = vpack.i.b16 %v631_v46, %v630_v14  ;;  %v814_v63 = vsel %vm213_vm6, %v741_v27, %v734_v1  ;;  %v820_v0 = vsel %vm213_vm6, %v819_v39, %v740_v9 }
 0x234   :  { %915 = vmatpush.bf16.xpose.msra.mxu1 %v906_v55  ;;  %v588_v52 = vsel %vm213_vm6, 0, %v587_v48  ;;  %v601_v59 = vsel %vm213_vm6, %v600_v51, %v593_v7  ;;  %v612_v60 = vperm.slane %v608_v53, %v1883_v47  ;;  %v619_v5 = vrot.slane %v618_v61, 4 }
 0x235   :  { %v925_v28 = vsel %vm901_vm7, %v632_v56, 0  ;;  %v635_v34 = vpack.i.b16 %v588_v52, %v569_v2  ;;  %v637_v38 = vshrl.u32 %v588_v52, 16  ;;  %v605_v4 = vperm.slane %v601_v59, %v1889_v57 }
 0x236   :  { %934 = vmatpush.bf16.xpose.msra.mxu2 %v925_v28  ;;  %v806_v10 = vrot.slane %v805_v62, 4  ;;  %v824_v1 = vperm.slane %v820_v0, %v1883_v47  ;;  %v374_v16 = vperm.slane %v2009_v13, %v1883_v47  ;;  %v620_v2 = vsel %vm213_vm6, %v619_v5, %v612_v60 }
 0x237   :  { %v944_v19 = vsel %vm901_vm7, %v635_v34, 0  ;;  %v638_v22 = vpack.i.b16 %v637_v38, %v636_v18  ;;  %v606_v14 = vrot.slane %v605_v4, 4  ;;  %v818_v23 = vperm.slane %v814_v63, %v1883_v47 }
 0x238   :  { %953 = vmatpush.bf16.xpose.msra.mxu3 %v944_v19  ;;  %v807_v21 = vsel %vm213_vm6, %v806_v10, %v799_v6  ;;  %v825_v25 = vrot.slane %v824_v1, 4  ;;  %v345_v58 = vsel %vm213_vm6, %v1976_v12, %v1974_v11  ;;  %v624_v18 = vperm.slane %v620_v2, %v1889_v57 }
 0x239   :  { %v963_v27 = vsel %vm901_vm7, %v638_v22, 0  ;;  %v607_v26 = vsel %vm213_vm6, 0, %v606_v14  ;;  %v642_v13 = vshrl.u32 %v605_v4, 16  ;;  %v811_v9 = vperm.slane %v807_v21, %v1889_v57 }
 0x23a   :  { %v826_v29 = vsel %vm213_vm6, %v825_v25, %v818_v23  ;;  %v364_v31 = vsel %vm213_vm6, %v1988_v20, %v1981_v15  ;;  %v641_v11 = vpack.i.b16 %v624_v18, %v605_v4  ;;  %v643_v12 = vshrl.u32 %v624_v18, 16 }
 0x23b   :  { %1641 = vmatmul.msk.bf16.vlgmr.msra.gmra.mxu1 %vm901_vm7, %v385_v37  ;;  %v625_v32 = vrot.slane %v624_v18, 4  ;;  %v830_v33 = vperm.slane %v826_v29, %v1889_v57  ;;  %v648_v6 = vshrl.u32 %v607_v26, 16  ;;  %v356_v7 = vrot.slane %v355_v3, 4 }
 0x23c   :  { %972 = vmatpush.bf16.xpose.msrb.mxu1 %v963_v27  ;;  %v375_v36 = vrot.slane %v374_v16, 4  ;;  %v982_v17 = vsel %vm901_vm7, %v641_v11, 0  ;;  %v644_v30 = vpack.i.b16 %v643_v12, %v642_v13  ;;  %v874_v39 = vshrl.u32 %v811_v9, 16 }
 0x23d   :  { %1642 = vmatmul.msk.bf16.vlgmr.msra.gmra.mxu2 %vm901_vm7, %v1946_v43  ;;  %v626_v35 = vsel %vm213_vm6, 0, %v625_v32  ;;  %v873_v37 = vpack.i.b16 %v830_v33, %v811_v9  ;;  %v875_v42 = vshrl.u32 %v830_v33, 16  ;;  %v831_v46 = vrot.slane %v830_v33, 4 }
 0x23e   :  { %991 = vmatpush.bf16.xpose.msrb.mxu2 %v982_v17  ;;  %v647_v15 = vpack.i.b16 %v626_v35, %v607_v26  ;;  %v649_v20 = vshrl.u32 %v626_v35, 16  ;;  %v1001_v50 = vsel %vm901_vm7, %v644_v30, 0  ;;  %v368_v43 = vperm.slane %v364_v31, %v1883_v47 }
 0x23f   :  { %1643 = vmatmul.msk.bf16.vlgmr.msra.gmra.mxu3 %vm901_vm7, %v391_v45  ;;  %v1155_v3 = vsel %vm1153_vm8, %v873_v37, 0  ;;  %v876_v53 = vpack.i.b16 %v875_v42, %v874_v39  ;;  %v812_v54 = vrot.slane %v811_v9, 4  ;;  %v349_v55 = vperm.slane %v345_v58, %v1883_v47 }
 0x240   :  { %1010 = vmatpush.bf16.xpose.msrb.mxu3 %v1001_v50  ;;  %v1020_v48 = vsel %vm901_vm7, %v647_v15, 0  ;;  %v650_v51 = vpack.i.b16 %v649_v20, %v648_v6  ;;  %v832_v45 = vsel %vm213_vm6, 0, %v831_v46  ;;  %v376_v56 = vsel %vm213_vm6, %v375_v36, %v368_v43 }
 0x241   :  { %v1174_v44 = vsel %vm1153_vm8, %v876_v53, 0  ;;  %v813_v61 = vsel %vm213_vm6, 0, %v812_v54  ;;  %v357_v62 = vsel %vm213_vm6, %v356_v7, %v349_v55  ;;  %v380_v63 = vperm.slane %v376_v56, %v1889_v57 }
 0x242   :  { %v1039_v41 = vsel %vm901_vm7, %v650_v51, 0  ;;  %1183 = vmatpush.bf16.msrb.mxu0 %v1174_v44  ;;  %v881_v52 = vshrl.u32 %v832_v45, 16  ;;  %v879_v59 = vpack.i.b16 %v832_v45, %v813_v61  ;;  %v361_v0 = vperm.slane %v357_v62, %v1889_v57 }
 0x243   :  { %v880_v28 = vshrl.u32 %v813_v61, 16  ;;  %v399_v38 = vshrl.u32 %v380_v63, 16  ;;  %v381_v19 = vrot.slane %v380_v63, 4  ;;  %v895_v25 = vlaneseq }
 0x244   :  { %1029 = vmatpush.bf16.xpose.msra.mxu1 %v1020_v48  ;;  %v1193_v4 = vsel %vm1153_vm8, %v879_v59, 0  ;;  %v397_v60 = vpack.i.b16 %v380_v63, %v361_v0  ;;  %v398_v5 = vshrl.u32 %v361_v0, 16  ;;  %v362_v22 = vrot.slane %v361_v0, 4 }
 0x245   :  { %v882_v34 = vpack.i.b16 %v881_v52, %v880_v28  ;;  %v382_v14 = vsel %vm213_vm6, 0, %v381_v19  ;;  %v896_v58 = vshrl.u32 %v895_v25, 7  ;;  %v898_v27 = vand.u32 127, %v895_v25  ;;  %v654_v52 = vpop.permute.xlu1 %653 }
 0x246   :  { %1048 = vmatpush.bf16.xpose.msra.mxu2 %v1039_v41  ;;  %v400_v1 = vpack.i.b16 %v399_v38, %v398_v5  ;;  %v363_v16 = vsel %vm213_vm6, 0, %v362_v22  ;;  %v1833_v18 = vmov -1e+30  }
 0x247   :  { %v1212_v10 = vsel %vm1153_vm8, %v882_v34, 0  ;;  %v403_v2 = vpack.i.b16 %v382_v14, %v363_v16  ;;  %v404_v21 = vshrl.u32 %v363_v16, 16  ;;  %vm899_vm9 = vcmp.ge.s32.totalorder %v896_v58, %v898_v27 }
 0x248   :  { %1164 = vmatpush.bf16.msra.mxu3 %v1155_v3  ;;  %v900_v26 = vsel %vm899_vm9, 0.0, %v1833_v18 }
 0x24b   :  { %1644 = vmatmul.msk.bf16.vlgmr.msrb.gmra.mxu1 %vm901_vm7, %v1955_v49  ;;  %v405_v49 = vshrl.u32 %v382_v14, 16 }
 0x24c   :  { %1202 = vmatpush.bf16.msrb.mxu1 %v1193_v4 }
 0x24d   :  { %1645 = vmatmul.msk.bf16.vlgmr.msrb.gmra.mxu2 %vm901_vm7, %v397_v60  ;;  %v406_v23 = vpack.i.b16 %v405_v49, %v404_v21 }
 0x24e   :  { %1221 = vmatpush.bf16.msrb.mxu2 %v1212_v10 }
 0x24f   :  { %1646 = vmatmul.msk.bf16.vlgmr.msrb.gmra.mxu3 %vm901_vm7, %v400_v1 }
 0x25b   :  { %1647 = vmatmul.msk.bf16.vlgmr.msra.gmra.mxu1 %vm901_vm7, %v403_v2 }
 0x25d   :  { %1648 = vmatmul.msk.bf16.vlgmr.msra.gmra.mxu2 %vm901_vm7, %v406_v23 }
 0x2b8   :  { %v917_v13 = vpop.f32.mrf.mxu1 }
 0x2b9   :  { %v918_v9 = vadd.f32 %v917_v13, %v900_v26 }
 0x2bb   :  { %v1054_v29 = vsel %vm901_vm7, %v918_v9, -inf }
 0x2bc   :  { %1055 = vmax.xlane.f32.xlu0 %v1054_v29 }
 0x2c0   :  { %v919_v31 = vpop.f32.mrf.mxu1  ;;  %v936_v11 = vpop.f32.mrf.mxu2 }
 0x2c1   :  { %v937_v12 = vadd.f32 %v936_v11, %v900_v26 }
 0x2c2   :  { %v955_v32 = vpop.f32.mrf.mxu3 }
 0x2c3   :  { %v956_v33 = vadd.f32 %v955_v32, %v900_v26  ;;  %v1057_v6 = vsel %vm901_vm7, %v937_v12, -inf }
 0x2c4   :  { %1058 = vmax.xlane.f32.xlu0 %v1057_v6 }
 0x2c5   :  { %v1060_v7 = vsel %vm901_vm7, %v956_v33, -inf }
 0x2c6   :  { %1061 = vmax.xlane.f32.xlu2 %v1060_v7 }
 0x2c8   :  { %v938_v36 = vpop.f32.mrf.mxu2  ;;  %v974_v17 = vpop.f32.mrf.mxu1 }
 0x2c9   :  { %v975_v30 = vadd.f32 %v974_v17, %v900_v26 }
 0x2ca   :  { %v957_v35 = vpop.f32.mrf.mxu3 }
 0x2cb   :  { %v1063_v37 = vsel %vm901_vm7, %v975_v30, -inf  ;;  %v682_v35 = vshrl.u32 %v654_v52, 16 }
 0x2cc   :  { %1064 = vmax.xlane.f32.xlu1 %v1063_v37 }
 0x2d0   :  { %v976_v15 = vpop.f32.mrf.mxu1  ;;  %v993_v20 = vpop.f32.mrf.mxu2 }
 0x2d1   :  { %v994_v39 = vadd.f32 %v993_v20, %v900_v26 }
 0x2d2   :  { %v1012_v42 = vpop.f32.mrf.mxu3 }
 0x2d3   :  { %v1066_v50 = vsel %vm901_vm7, %v994_v39, -inf  ;;  %v1013_v3 = vadd.f32 %v1012_v42, %v900_v26 }
 0x2d4   :  { %1067 = vmax.xlane.f32.xlu2 %v1066_v50 }
 0x2d5   :  { %v1069_v53 = vsel %vm901_vm7, %v1013_v3, -inf }
 0x2d8   :  { %v995_v46 = vpop.f32.mrf.mxu2  ;;  %v1031_v43 = vpop.f32.mrf.mxu1 }
 0x2d9   :  { %v1032_v48 = vadd.f32 %v1031_v43, %v900_v26 }
 0x2da   :  { %v1014_v51 = vpop.f32.mrf.mxu3 }
 0x2db   :  { %v1072_v54 = vsel %vm901_vm7, %v1032_v48, -inf }
 0x2dc   :  { %1070 = vmax.xlane.f32.xlu2 %v1069_v53  ;;  %1073 = vmax.xlane.f32.xlu0 %v1072_v54 }
 0x2e0   :  { %v1033_v55 = vpop.f32.mrf.mxu1  ;;  %v1050_v41 = vpop.f32.mrf.mxu2 }
 0x2e1   :  { %v1051_v44 = vadd.f32 %v1050_v41, %v900_v26 }
 0x2e3   :  { %v1075_v45 = vsel %vm901_vm7, %v1051_v44, -inf }
 0x2e4   :  { %1076 = vmax.xlane.f32.xlu1 %v1075_v45 }
 0x2e8   :  { %v1052_v56 = vpop.f32.mrf.mxu2 }
 0x2f0   :  { %661 = vrot.lane.b32.xlu0 %v1900_v8, %s1825_s21 }
 0x2f4   :  { %657 = vrot.lane.b32.xlu2 %v1875_v40, %s1825_s21 }
 0x2fd   :  { %665 = vrot.lane.b32.xlu1 %v1916_v24, %s1825_s21 }
 0x32f   :  { %v1056_v61 = vpop.xlane.xlu0 %1055 }
 0x330   :  { %v1078_v62 = vsub.f32 %v918_v9, %v1056_v61 }
 0x332   :  { %v1086_v63 = vmul.f32 1.442695, %v1078_v62 }
 0x334   :  { %1711 = vpow2.f32 %v1086_v63 }
 0x337   :  { %v1059_v59 = vpop.xlane.xlu0 %1058 }
 0x338   :  { %v1079_v0 = vsub.f32 %v937_v12, %v1059_v59 }
 0x339   :  { %v1062_v28 = vpop.xlane.xlu2 %1061 }
 0x33a   :  { %v2164_v34 = vpop.eup %1711  ;;  %v1088_v38 = vmul.f32 1.442695, %v1079_v0  ;;  %v1080_v4 = vsub.f32 %v956_v33, %v1062_v28 }
 0x33b   :  { %v1102_v8 = vsel %vm901_vm7, %v2164_v34, 0.0 }
 0x33c   :  { %1713 = vpow2.f32 %v1088_v38  ;;  %v1090_v40 = vmul.f32 1.442695, %v1080_v4  ;;  %1103 = vadd.xlane.f32.xlu2 %v1102_v8 }
 0x33e   :  { %1715 = vpow2.f32 %v1090_v40 }
 0x33f   :  { %v1065_v24 = vpop.xlane.xlu1 %1064 }
 0x340   :  { %v1081_v60 = vsub.f32 %v975_v30, %v1065_v24 }
 0x342   :  { %v2168_v5 = vpop.eup %1713  ;;  %v1092_v10 = vmul.f32 1.442695, %v1081_v60 }
 0x343   :  { %v1105_v1 = vsel %vm901_vm7, %v2168_v5, 0.0 }
 0x344   :  { %v2172_v19 = vpop.eup %1715  ;;  %1717 = vpow2.f32 %v1092_v10  ;;  %1106 = vadd.xlane.f32.xlu2 %v1105_v1 }
 0x345   :  { %v1108_v22 = vsel %vm901_vm7, %v2172_v19, 0.0 }
 0x346   :  { %1109 = vadd.xlane.f32.xlu1 %v1108_v22 }
 0x347   :  { %v1068_v14 = vpop.xlane.xlu2 %1067 }
 0x348   :  { %v1082_v16 = vsub.f32 %v994_v39, %v1068_v14 }
 0x34a   :  { %v2176_v49 = vpop.eup %1717  ;;  %v1094_v2 = vmul.f32 1.442695, %v1082_v16 }
 0x34b   :  { %v1111_v21 = vsel %vm901_vm7, %v2176_v49, 0.0 }
 0x34c   :  { %1719 = vpow2.f32 %v1094_v2  ;;  %1112 = vadd.xlane.f32.xlu0 %v1111_v21 }
 0x34f   :  { %v1071_v23 = vpop.xlane.xlu2 %1070  ;;  %v1074_v25 = vpop.xlane.xlu0 %1073 }
 0x350   :  { %v1083_v58 = vsub.f32 %v1013_v3, %v1071_v23  ;;  %v1084_v27 = vsub.f32 %v1032_v48, %v1074_v25 }
 0x352   :  { %v2180_v18 = vpop.eup %1719  ;;  %v1096_v26 = vmul.f32 1.442695, %v1083_v58  ;;  %v1098_v13 = vmul.f32 1.442695, %v1084_v27 }
 0x353   :  { %v1114_v9 = vsel %vm901_vm7, %v2180_v18, 0.0 }
 0x354   :  { %1721 = vpow2.f32 %v1096_v26  ;;  %1115 = vadd.xlane.f32.xlu0 %v1114_v9 }
 0x355   :  { %1723 = vpow2.f32 %v1098_v13 }
 0x357   :  { %v1077_v29 = vpop.xlane.xlu1 %1076  ;;  %v658_v17 = vpop.permute.xlu2 %657 }
 0x358   :  { %v1085_v31 = vsub.f32 %v1051_v44, %v1077_v29  ;;  %v683_v30 = vshrl.u32 %v658_v17, 16  ;;  %v681_v37 = vpack.i.b16 %v658_v17, %v654_v52 }
 0x35a   :  { %v2184_v11 = vpop.eup %1721  ;;  %v1100_v12 = vmul.f32 1.442695, %v1085_v31  ;;  %v684_v15 = vpack.i.b16 %v683_v30, %v682_v35  ;;  %v747_v39 = vperm.slane %v681_v37, %v1883_v47 }
 0x35b   :  { %v2186_v32 = vpop.eup %1723  ;;  %v1117_v33 = vsel %vm901_vm7, %v2184_v11, 0.0 }
 0x35c   :  { %1725 = vpow2.f32 %v1100_v12  ;;  %1118 = vadd.xlane.f32.xlu0 %v1117_v33  ;;  %v1120_v6 = vsel %vm901_vm7, %v2186_v32, 0.0  ;;  %v773_v50 = vperm.slane %v684_v15, %v1883_v47  ;;  %v755_v48 = vrot.slane %v747_v39, 4 }
 0x35d   :  { %1121 = vadd.xlane.f32.xlu2 %v1120_v6 }
 0x35e   :  { %v781_v54 = vrot.slane %v773_v50, 4 }
 0x362   :  { %v2192_v7 = vpop.eup %1725  ;;  %v662_v20 = vpop.permute.xlu0 %661 }
 0x363   :  { %v1123_v36 = vsel %vm901_vm7, %v2192_v7, 0.0  ;;  %v688_v3 = vshrl.u32 %v662_v20, 16 }
 0x364   :  { %1124 = vadd.xlane.f32.xlu1 %v1123_v36 }
 0x36f   :  { %v666_v42 = vpop.permute.xlu1 %665 }
 0x370   :  { %v687_v46 = vpack.i.b16 %v666_v42, %v662_v20  ;;  %v689_v43 = vshrl.u32 %v666_v42, 16 }
 0x372   :  { %v690_v51 = vpack.i.b16 %v689_v43, %v688_v3  ;;  %v752_v53 = vperm.slane %v687_v46, %v1883_v47 }
 0x374   :  { %v753_v55 = vrot.slane %v752_v53, 4  ;;  %v756_v41 = vsel %vm213_vm6, %v752_v53, %v755_v48  ;;  %v778_v44 = vperm.slane %v690_v51, %v1883_v47 }
 0x375   :  { %v764_v45 = vperm.slane %v756_v41, %v1889_v57 }
 0x376   :  { %v754_v56 = vsel %vm213_vm6, %v753_v55, %v747_v39  ;;  %v779_v61 = vrot.slane %v778_v44, 4  ;;  %v782_v62 = vsel %vm213_vm6, %v778_v44, %v781_v54 }
 0x377   :  { %v760_v63 = vperm.slane %v754_v56, %v1889_v57  ;;  %v767_v52 = vrot.slane %v764_v45, 4  ;;  %v790_v59 = vperm.slane %v782_v62, %v1889_v57 }
 0x378   :  { %v780_v0 = vsel %vm213_vm6, %v779_v61, %v773_v50 }
 0x379   :  { %v765_v28 = vrot.slane %v760_v63, 4  ;;  %v768_v38 = vsel %vm213_vm6, 0, %v767_v52  ;;  %v786_v4 = vperm.slane %v780_v0, %v1889_v57  ;;  %v793_v8 = vrot.slane %v790_v59, 4 }
 0x37a   :  { %v838_v40 = vrot.slane %v768_v38, 4  ;;  %v833_v1 = vsel %vm213_vm6, %v767_v52, %v760_v63 }
 0x37b   :  { %v766_v24 = vsel %vm213_vm6, 0, %v765_v28  ;;  %v791_v60 = vrot.slane %v786_v4, 4  ;;  %v794_v10 = vsel %vm213_vm6, 0, %v793_v8  ;;  %v852_v21 = vsel %vm213_vm6, %v793_v8, %v786_v4 }
 0x37c   :  { %v839_v22 = vsel %vm213_vm6, %v838_v40, %v766_v24  ;;  %v857_v14 = vrot.slane %v794_v10, 4  ;;  %v837_v25 = vperm.slane %v833_v1, %v1883_v47  ;;  %v856_v13 = vperm.slane %v852_v21, %v1883_v47 }
 0x37d   :  { %v792_v16 = vsel %vm213_vm6, 0, %v791_v60  ;;  %v843_v2 = vperm.slane %v839_v22, %v1883_v47 }
 0x37e   :  { %v858_v23 = vsel %vm213_vm6, %v857_v14, %v792_v16 }
 0x37f   :  { %v844_v58 = vrot.slane %v843_v2, 4  ;;  %v862_v27 = vperm.slane %v858_v23, %v1883_v47 }
 0x381   :  { %v845_v26 = vsel %vm213_vm6, %v844_v58, %v837_v25  ;;  %v863_v9 = vrot.slane %v862_v27, 4 }
 0x382   :  { %v849_v29 = vperm.slane %v845_v26, %v1889_v57 }
 0x383   :  { %v864_v31 = vsel %vm213_vm6, %v863_v9, %v856_v13 }
 0x384   :  { %v868_v12 = vperm.slane %v864_v31, %v1889_v57  ;;  %v850_v33 = vrot.slane %v849_v29, 4  ;;  %v886_v6 = vshrl.u32 %v849_v29, 16 }
 0x386   :  { %v885_v36 = vpack.i.b16 %v868_v12, %v849_v29  ;;  %v887_v17 = vshrl.u32 %v868_v12, 16  ;;  %v851_v30 = vsel %vm213_vm6, 0, %v850_v33  ;;  %v869_v35 = vrot.slane %v868_v12, 4 }
 0x387   :  { %v892_v42 = vshrl.u32 %v851_v30, 16 }
 0x388   :  { %v1231_v37 = vsel %vm1153_vm8, %v885_v36, 0  ;;  %v888_v15 = vpack.i.b16 %v887_v17, %v886_v6  ;;  %v870_v20 = vsel %vm213_vm6, 0, %v869_v35 }
 0x389   :  { %1240 = vmatpush.bf16.msrb.mxu3 %v1231_v37  ;;  %v891_v39 = vpack.i.b16 %v870_v20, %v851_v30  ;;  %v893_v50 = vshrl.u32 %v870_v20, 16 }
 0x38a   :  { %v1250_v3 = vsel %vm1153_vm8, %v888_v15, 0 }
 0x38b   :  { %1259 = vmatpush.bf16.msra.mxu0 %v1250_v3  ;;  %v1269_v46 = vsel %vm1153_vm8, %v891_v39, 0  ;;  %v894_v43 = vpack.i.b16 %v893_v50, %v892_v42 }
 0x38c   :  { %1278 = vmatpush.bf16.msra.mxu1 %v1269_v46 }
 0x38d   :  { %v1288_v48 = vsel %vm1153_vm8, %v894_v43, 0 }
 0x38e   :  { %1297 = vmatpush.bf16.msra.mxu2 %v1288_v48 }
 0x3af   :  { %v1104_v51 = vpop.xlane.xlu2 %1103 }
 0x3b0   :  { %1727 = vrcp.f32 %v1104_v51 }
 0x3b6   :  { %v1728_v53 = vpop.eup %1727 }
 0x3b7   :  { %v1134_v54 = vmul.f32 %v1728_v53, %v2164_v34  ;;  %v1107_v55 = vpop.xlane.xlu2 %1106 }
 0x3b8   :  { %1729 = vrcp.f32 %v1107_v55 }
 0x3b9   :  { %v1142_v41 = vpack.c.bf16 %v1134_v54, %v1134_v54  ;;  %v1110_v44 = vpop.xlane.xlu1 %1109 }
 0x3ba   :  { %1731 = vrcp.f32 %v1110_v44 }
 0x3bb   :  { %1649 = vmatmul.msk.bf16.vlgmr.msra.gmra.mxu3 %vm901_vm7, %v1142_v41 }
 0x3be   :  { %v1730_v45 = vpop.eup %1729 }
 0x3bf   :  { %v1135_v56 = vmul.f32 %v1730_v45, %v2168_v5  ;;  %v1113_v61 = vpop.xlane.xlu0 %1112 }
 0x3c0   :  { %v1732_v62 = vpop.eup %1731  ;;  %1733 = vrcp.f32 %v1113_v61 }
 0x3c1   :  { %v1136_v63 = vmul.f32 %v1732_v62, %v2172_v19  ;;  %v1143_v52 = vpack.c.bf16 %v1135_v56, %v1135_v56 }
 0x3c3   :  { %v1144_v59 = vpack.c.bf16 %v1136_v63, %v1136_v63  ;;  %1650 = vmatmul.msk.bf16.vlgmr.msrb.gmra.mxu0 %vm901_vm7, %v1143_v52 }
 0x3c5   :  { %1651 = vmatmul.msk.bf16.vlgmr.msrb.gmra.mxu1 %vm901_vm7, %v1144_v59 }
 0x3c6   :  { %v1734_v34 = vpop.eup %1733 }
 0x3c7   :  { %v1137_v0 = vmul.f32 %v1734_v34, %v2176_v49  ;;  %v1116_v28 = vpop.xlane.xlu0 %1115 }
 0x3c8   :  { %1735 = vrcp.f32 %v1116_v28 }
 0x3c9   :  { %v1145_v38 = vpack.c.bf16 %v1137_v0, %v1137_v0 }
 0x3cb   :  { %1652 = vmatmul.msk.bf16.vlgmr.msrb.gmra.mxu2 %vm901_vm7, %v1145_v38 }
 0x3ce   :  { %v1736_v5 = vpop.eup %1735 }
 0x3cf   :  { %v1138_v4 = vmul.f32 %v1736_v5, %v2180_v18  ;;  %v1119_v8 = vpop.xlane.xlu0 %1118 }
 0x3d0   :  { %v1122_v40 = vpop.xlane.xlu2 %1121  ;;  %1737 = vrcp.f32 %v1119_v8 }
 0x3d1   :  { %v1146_v19 = vpack.c.bf16 %v1138_v4, %v1138_v4  ;;  %1739 = vrcp.f32 %v1122_v40 }
 0x3d3   :  { %1653 = vmatmul.msk.bf16.vlgmr.msrb.gmra.mxu3 %vm901_vm7, %v1146_v19 }
 0x3d6   :  { %v1738_v24 = vpop.eup %1737 }
 0x3d7   :  { %v1740_v60 = vpop.eup %1739  ;;  %v1139_v10 = vmul.f32 %v1738_v24, %v2184_v11  ;;  %v1125_v49 = vpop.xlane.xlu1 %1124 }
 0x3d8   :  { %v1140_v1 = vmul.f32 %v1740_v60, %v2186_v32  ;;  %1741 = vrcp.f32 %v1125_v49 }
 0x3d9   :  { %v1147_v22 = vpack.c.bf16 %v1139_v10, %v1139_v10 }
 0x3da   :  { %v1148_v14 = vpack.c.bf16 %v1140_v1, %v1140_v1 }
 0x3db   :  { %1654 = vmatmul.msk.bf16.vlgmr.msra.gmra.mxu0 %vm901_vm7, %v1147_v22 }
 0x3dc   :  { %1655 = vmatmul.msk.bf16.vlgmr.msra.gmra.mxu1 %vm901_vm7, %v1148_v14 }
 0x3de   :  { %v1742_v18 = vpop.eup %1741 }
 0x3df   :  { %v1141_v16 = vmul.f32 %v1742_v18, %v2192_v7 }
 0x3e1   :  { %v1149_v2 = vpack.c.bf16 %v1141_v16, %v1141_v16 }
 0x3e3   :  { %1656 = vmatmul.msk.bf16.vlgmr.msra.gmra.mxu2 %vm901_vm7, %v1149_v2 }
 0x43e   :  { %v1166_v21 = vpop.f32.mrf.mxu3 }
 0x43f   :  { %v1306_v11 = vrot.slane %v1166_v21, 4 }
 0x440   :  { %v1185_v23 = vpop.f32.mrf.mxu0 }
 0x441   :  { %v1318_v31 = vrot.slane %v1185_v23, 4 }
 0x442   :  { %v1204_v25 = vpop.f32.mrf.mxu1 }
 0x443   :  { %v1303_v27 = vrot.slane %v1204_v25, 4  ;;  %v1307_v26 = vsel %vm213_vm6, %v1204_v25, %v1306_v11 }
 0x444   :  { %v1315_v29 = vperm.slane %v1307_v26, %v1883_v47 }
 0x445   :  { %v1305_v9 = vsel %vm213_vm6, %v1303_v27, %v1166_v21 }
 0x446   :  { %v1168_v58 = vpop.f32.mrf.mxu3  ;;  %v1311_v7 = vperm.slane %v1305_v9, %v1883_v47  ;;  %v1342_v36 = vrot.slane %v1315_v29, 4 }
 0x448   :  { %v1187_v32 = vpop.f32.mrf.mxu0  ;;  %v1330_v35 = vrot.slane %v1311_v7, 4 }
 0x44a   :  { %v1206_v13 = vpop.f32.mrf.mxu1 }
 0x44e   :  { %v1223_v12 = vpop.f32.mrf.mxu2 }
 0x44f   :  { %v1316_v33 = vrot.slane %v1223_v12, 4  ;;  %v1319_v6 = vsel %vm213_vm6, %v1223_v12, %v1318_v31 }
 0x450   :  { %v1327_v17 = vperm.slane %v1319_v6, %v1883_v47 }
 0x451   :  { %v1317_v30 = vsel %vm213_vm6, %v1316_v33, %v1185_v23 }
 0x452   :  { %v1323_v37 = vperm.slane %v1317_v30, %v1883_v47  ;;  %v1340_v15 = vrot.slane %v1327_v17, 4  ;;  %v1343_v20 = vsel %vm213_vm6, %v1327_v17, %v1342_v36 }
 0x453   :  { %v1351_v39 = vperm.slane %v1343_v20, %v1889_v57 }
 0x454   :  { %v1328_v42 = vrot.slane %v1323_v37, 4  ;;  %v1331_v50 = vsel %vm213_vm6, %v1323_v37, %v1330_v35  ;;  %v1341_v3 = vsel %vm213_vm6, %v1340_v15, %v1315_v29 }
 0x455   :  { %v1339_v46 = vperm.slane %v1331_v50, %v1889_v57  ;;  %v1347_v43 = vperm.slane %v1341_v3, %v1889_v57  ;;  %v1358_v48 = vrot.slane %v1351_v39, 4 }
 0x456   :  { %v1329_v51 = vsel %vm213_vm6, %v1328_v42, %v1311_v7  ;;  %v1225_v53 = vpop.f32.mrf.mxu2  ;;  %v1242_v54 = vpop.f32.mrf.mxu3 }
 0x457   :  { %v1335_v55 = vperm.slane %v1329_v51, %v1889_v57  ;;  %v1354_v41 = vrot.slane %v1339_v46, 4  ;;  %v1356_v44 = vrot.slane %v1347_v43, 4  ;;  %v1359_v45 = vsel %vm213_vm6, 0.0, %v1358_v48 }
 0x458   :  { %v1432_v56 = vrot.slane %v1359_v45, 4  ;;  %v1261_v61 = vpop.f32.mrf.mxu0  ;;  %v1427_v0 = vsel %vm213_vm6, %v1358_v48, %v1347_v43  ;;  %v1362_v19 = vrot.slane %v1242_v54, 4 }
 0x459   :  { %v1352_v62 = vrot.slane %v1335_v55, 4  ;;  %v1355_v63 = vsel %vm213_vm6, 0.0, %v1354_v41  ;;  %v1357_v52 = vsel %vm213_vm6, 0.0, %v1356_v44  ;;  %v1280_v59 = vpop.f32.mrf.mxu1  ;;  %v1416_v4 = vsel %vm213_vm6, %v1354_v41, %v1335_v55 }
 0x45a   :  { %v1421_v34 = vrot.slane %v1355_v63, 4  ;;  %v1433_v28 = vsel %vm213_vm6, %v1432_v56, %v1357_v52  ;;  %v1431_v40 = vperm.slane %v1427_v0, %v1883_v47  ;;  %v1360_v49 = vrot.slane %v1280_v59, 4 }
 0x45b   :  { %v1437_v38 = vperm.slane %v1433_v28, %v1883_v47  ;;  %v1353_v5 = vsel %vm213_vm6, 0.0, %v1352_v62  ;;  %v1420_v1 = vperm.slane %v1416_v4, %v1883_v47  ;;  %v1363_v2 = vsel %vm213_vm6, %v1280_v59, %v1362_v19 }
 0x45c   :  { %v1422_v8 = vsel %vm213_vm6, %v1421_v34, %v1353_v5  ;;  %v1361_v58 = vsel %vm213_vm6, %v1360_v49, %v1242_v54  ;;  %v1371_v27 = vperm.slane %v1363_v2, %v1883_v47  ;;  %v1374_v26 = vrot.slane %v1261_v61, 4 }
 0x45d   :  { %v1426_v24 = vperm.slane %v1422_v8, %v1883_v47  ;;  %v1450_v60 = vrot.slane %v1437_v38, 4  ;;  %v1367_v13 = vperm.slane %v1361_v58, %v1883_v47  ;;  %v1452_v7 = vrot.slane %v1431_v40, 4 }
 0x45e   :  { %v1244_v10 = vpop.f32.mrf.mxu3  ;;  %v1398_v12 = vrot.slane %v1371_v27, 4  ;;  %v1440_v36 = vrot.slane %v1420_v1, 4 }
 0x45f   :  { %v1438_v22 = vrot.slane %v1426_v24, 4  ;;  %v1451_v14 = vsel %vm213_vm6, %v1450_v60, %v1431_v40  ;;  %v1386_v17 = vrot.slane %v1367_v13, 4  ;;  %v1453_v50 = vsel %vm213_vm6, %v1437_v38, %v1452_v7 }
 0x460   :  { %v1263_v18 = vpop.f32.mrf.mxu0  ;;  %v2276_v16 = vperm.slane %v1451_v14, %v1889_v57  ;;  %v1441_v48 = vsel %vm213_vm6, %v1426_v24, %v1440_v36  ;;  %v1461_v62 = vperm.slane %v1453_v50, %v1889_v57 }
 0x461   :  { %v1282_v21 = vpop.f32.mrf.mxu1  ;;  %v1439_v23 = vsel %vm213_vm6, %v1438_v22, %v1420_v1 }
 0x462   :  { %v2281_v25 = vperm.slane %v1439_v23, %v1889_v57  ;;  %v1462_v11 = vrot.slane %v2276_v16, 4  ;;  %v1466_v49 = vrot.slane %v1461_v62, 4 }
 0x464   :  { %v2288_v32 = vsel %vm213_vm6, %v1462_v11, %v2281_v25 }
 0x466   :  { %v1299_v9 = vpop.f32.mrf.mxu2 }
 0x467   :  { %v1372_v29 = vrot.slane %v1299_v9, 4  ;;  %v1375_v31 = vsel %vm213_vm6, %v1299_v9, %v1374_v26  ;;  %v1464_v26 = vrot.slane %v2281_v25, 4 }
 0x468   :  { %v1383_v33 = vperm.slane %v1375_v31, %v1883_v47 }
 0x469   :  { %v1373_v6 = vsel %vm213_vm6, %v1372_v29, %v1261_v61  ;;  %v1449_v61 = vperm.slane %v1441_v48, %v1889_v57  ;;  %v1465_v25 = vsel %vm213_vm6, %v2276_v16, %v1464_v26 }
 0x46a   :  { %v1379_v30 = vperm.slane %v1373_v6, %v1883_v47  ;;  %v1396_v35 = vrot.slane %v1383_v33, 4  ;;  %v1399_v37 = vsel %vm213_vm6, %v1383_v33, %v1398_v12 }
 0x46b   :  { %v1407_v15 = vperm.slane %v1399_v37, %v1889_v57  ;;  %v1468_v22 = vrot.slane %v1449_v61, 4  ;;  %v1467_v29 = vsel %vm213_vm6, %v1466_v49, %v1449_v61  ;;  %v1674_v37 = vld [vmem:[#allocation5 + $0x40] sm:$0xff] }
 0x46c   :  { %v1384_v20 = vrot.slane %v1379_v30, 4  ;;  %v1387_v39 = vsel %vm213_vm6, %v1379_v30, %v1386_v17  ;;  %v1397_v42 = vsel %vm213_vm6, %v1396_v35, %v1371_v27  ;;  %v1675_v35 = vld [vmem:[#allocation5 + $0x48] sm:$0xff] }
 0x46d   :  { %v1395_v3 = vperm.slane %v1387_v39, %v1889_v57  ;;  %v1403_v46 = vperm.slane %v1397_v42, %v1889_v57  ;;  %v1414_v43 = vrot.slane %v1407_v15, 4  ;;  %v1469_v7 = vsel %vm213_vm6, %v1461_v62, %v1468_v22  ;;  %1579 = vmatpush.bf16.msra.mxu3 %v1675_v35 }
 0x46e   :  { %v1385_v51 = vsel %vm213_vm6, %v1384_v20, %v1367_v13  ;;  %v1301_v53 = vpop.f32.mrf.mxu2 }
 0x46f   :  { %v1391_v54 = vperm.slane %v1385_v51, %v1889_v57  ;;  %v1410_v55 = vrot.slane %v1395_v3, 4  ;;  %v1412_v41 = vrot.slane %v1403_v46, 4  ;;  %v1415_v44 = vsel %vm213_vm6, 0.0, %v1414_v43 }
 0x470   :  { %v1481_v45 = vsel %vm213_vm6, %v1414_v43, %v1403_v46  ;;  %v1486_v56 = vrot.slane %v1415_v44, 4 }
 0x471   :  { %v1408_v63 = vrot.slane %v1391_v54, 4  ;;  %v1411_v52 = vsel %vm213_vm6, 0.0, %v1410_v55  ;;  %v1413_v59 = vsel %vm213_vm6, 0.0, %v1412_v41  ;;  %v1470_v34 = vsel %vm213_vm6, %v1410_v55, %v1391_v54  ;;  %1580 = vmatpush.bf16.msra.mxu3 %v1674_v37 }
 0x472   :  { %v1475_v0 = vrot.slane %v1411_v52, 4  ;;  %v1485_v28 = vperm.slane %v1481_v45, %v1883_v47  ;;  %v1487_v38 = vsel %vm213_vm6, %v1486_v56, %v1413_v59  ;;  %v1474_v5 = vperm.slane %v1470_v34, %v1883_v47 }
 0x473   :  { %v1491_v4 = vperm.slane %v1487_v38, %v1883_v47  ;;  %v1409_v8 = vsel %vm213_vm6, 0.0, %v1408_v63 }
 0x474   :  { %v1506_v40 = vrot.slane %v1485_v28, 4  ;;  %v1476_v19 = vsel %vm213_vm6, %v1475_v0, %v1409_v8  ;;  %v1494_v24 = vrot.slane %v1474_v5, 4 }
 0x475   :  { %v1480_v60 = vperm.slane %v1476_v19, %v1883_v47  ;;  %v1504_v10 = vrot.slane %v1491_v4, 4 }
 0x476   :  { %v1507_v1 = vsel %vm213_vm6, %v1491_v4, %v1506_v40 }
 0x477   :  { %v1495_v14 = vsel %vm213_vm6, %v1480_v60, %v1494_v24  ;;  %v1515_v18 = vperm.slane %v1507_v1, %v1889_v57  ;;  %v1492_v2 = vrot.slane %v1480_v60, 4  ;;  %v1505_v21 = vsel %vm213_vm6, %v1504_v10, %v1485_v28 }
 0x478   :  { %v1503_v23 = vperm.slane %v1495_v14, %v1889_v57  ;;  %v1511_v11 = vperm.slane %v1505_v21, %v1889_v57 }
 0x479   :  { %v1520_v58 = vrot.slane %v1515_v18, 4  ;;  %v1493_v27 = vsel %vm213_vm6, %v1492_v2, %v1474_v5 }
 0x47a   :  { %v1522_v47 = vrot.slane %v1503_v23, 4  ;;  %v1499_v13 = vperm.slane %v1493_v27, %v1889_v57  ;;  %v1516_v9 = vrot.slane %v1511_v11, 4 }
 0x47b   :  { %v1521_v31 = vsel %vm213_vm6, %v1520_v58, %v1503_v23 }
 0x47c   :  { %v1697_v12 = vpack.i.bf16 %v1521_v31, %v1467_v29  ;;  %v1523_v33 = vsel %vm213_vm6, %v1515_v18, %v1522_v47  ;;  %v1518_v6 = vrot.slane %v1499_v13, 4  ;;  %v1517_v36 = vsel %vm213_vm6, %v1516_v9, %v1499_v13 }
 0x47d   :  { %v1702_v17 = vpack.i.bf16 %v1523_v33, %v1469_v7 }
 0x47e   :  { %1698 = vrot.lane.b32.xlu2 %v1697_v12, %s1834_s25  ;;  %v1519_v57 = vsel %vm213_vm6, %v1511_v11, %v1518_v6 }
 0x47f   :  { %1703 = vrot.lane.b32.xlu0 %v1702_v17, %s1835_s26  ;;  %v1692_v30 = vpack.i.bf16 %v1519_v57, %v1465_v25 }
 0x481   :  { %1693 = vrot.lane.b32.xlu1 %v1692_v30, %s1823_s18 }
 0x4d8   :  { %v1699_v15 = vpop.permute.xlu2 %1698 }
 0x4d9   :  { %v1701_v3 = vunpack.i.h.bf16 %v1699_v15  ;;  %v1700_v46 = vunpack.i.l.bf16 %v1699_v15 }
 0x4f1   :  { %v1704_v20 = vpop.permute.xlu0 %1703 }
 0x4f2   :  { %v1706_v16 = vunpack.i.h.bf16 %v1704_v20  ;;  %v1705_v43 = vunpack.i.l.bf16 %v1704_v20 }
 0x4f3   :  { %v1694_v39 = vpop.permute.xlu1 %1693 }
 0x4f4   :  { %v1696_v42 = vunpack.i.h.bf16 %v1694_v39  ;;  %v1695_v50 = vunpack.i.l.bf16 %v1694_v39 }
 0x4f6   :  { %v1548_v48 = vsel %vm901_vm7, %v2288_v32, %v1695_v50  ;;  %v1549_v51 = vsel %vm901_vm7, %v1517_v36, %v1696_v42 }
 0x4f7   :  { %v1551_v53 = vsel %vm1550_vm10, %v1548_v48, %v1700_v46  ;;  %v1552_v54 = vsel %vm1550_vm10, %v1549_v51, %v1701_v3 }
 0x4f8   :  { %v1554_v55 = vsel %vm1553_vm11, %v1551_v53, %v1705_v43  ;;  %v1555_v41 = vsel %vm1553_vm11, %v1552_v54, %v1706_v16 }
 0x4f9   :  { %v1556_v44 = vpack.c.bf16 %v1555_v41, %v1554_v55 }
 0x4fb   :  { %1665 = vmatmul.msk.bf16.vlgmr.msra.gmra.mxu3 %vm1569_vm12, %v1556_v44 }
 0x57e   :  { %v1582_v45 = vpop.f32.mrf.mxu3 }
 0x57f   :  { %1587 = vst [vmem:[#allocation7] sm:$0xff] %v1582_v45 }
 0x586   :  { %v1584_v32 = vpop.f32.mrf.mxu3 }
 0x587   :  { %1588 = vst [vmem:[#allocation7 + $0x8] sm:$0xff] %v1584_v32 }
 0x588   :  { %1601 = dma.vmem_to_hbm [thread:$0]  %s1594_s28, 256, %s1596_s3, [#allocation4], %s1822_s17, %s1822_s17, %s1823_s18  }
 0x589   :  { %1819 = dma.done.wait [#allocation4], 256  }
 0x58a   :  { %1820 = vsyncadd [#allocation4], 4294967040 }
 0x58b   :  { %1606 = vsyncpa [#allocation3], 1 }
 0x58c   :  { %1607 = vsyncpa [#allocation6], 1 }
 0x58d   :  { %1608 = vsyncpa [#allocation4], 1 }

</bundles_post_ra>
